<compile_context>
chip_gen: v5e
topology: v5e:2x2
jax: 0.10.0
libtpu: 0.0.40
codegen_flags: <defaults>
</compile_context>

<pallas_src>
import jax
import jax.numpy as jnp
from jax.experimental import pallas as pl
from jax.experimental.pallas import tpu as pltpu

CP_PAD = 128      # padded patch-feature width (lane multiple)
HEADW = 256       # fused head width: [wscore | pad]_0..127  [wq]_128..255
OUTW = 128        # lane-dense packed output width


# ----------------------------------------------------------------------------
# Fused Pallas kernel: qformer1.forward_3score + qformer2.forward_llm
# ----------------------------------------------------------------------------

def mintiqa_kernel(img_ref, wp_ref, txt_emb_ref, txt_mask_ref, wt_ref,
                   wheads_ref, bheads_ref, tq_emb_ref, tq_mask_ref,
                   wtq_ref, wllm_ref, out_ref):
    """Fused synthetic qformer1 + qformer2 forward.

    img     : (B, CP_PAD) bf16   patch-mean image feature (zero padded)
    wp      : (CP_PAD, D)        patch embedding (zero-padded rows)
    txt_emb : (B, L, D)   bf16   token embeddings (text branch)
    txt_mask: (B, L)      f32
    wt      : (D, D)             text projection
    wheads  : (D, HEADW)         fused [score heads | quality-vector head]
    bheads  : (1, HEADW)
    tq_emb  : (B, L, D)   bf16   token embeddings (tq branch)
    tq_mask : (B, L)      f32
    wtq     : (D, Dq)            tq projection
    wllm    : (Dq, V)            LLM head
    out     : (B, OUTW)   f32    lanes 0..2 = sigmoid scores, lane 3 = nll
    """
    B = out_ref.shape[0]
    Dq = wtq_ref.shape[1]

    # ---- qformer1.forward_3score ------------------------------------------
    # Patch mean was folded through the patch-embedding matmul (linearity),
    # so only a tiny (B, Cp_pad) @ (Cp_pad, D) remains.
    img_feat = jnp.dot(img_ref[...].astype(jnp.float32), wp_ref[...],
                       preferred_element_type=jnp.float32)          # (B, D)

    # Masked mean pooling of text tokens (f32 elementwise; v5e has no bf16
    # VPU).  At production L/D this should be routed to the MXU as a
    # 'bql,bld->bqd' contraction instead of a broadcast-multiply + reduce.
    txt = txt_emb_ref[...].astype(jnp.float32)                      # (B, L, D)
    mask = txt_mask_ref[...]
    msum = jnp.maximum(jnp.sum(mask, axis=1, keepdims=True), 1.0)
    txt_pool = jnp.sum(txt * (mask / msum)[:, :, None], axis=1)     # (B, D)
    txt_feat = jnp.dot(txt_pool, wt_ref[...],
                       preferred_element_type=jnp.float32)          # (B, D)

    joint = img_feat * txt_feat                                     # (B, D)

    # Fused score + quality-vector heads: one lane-dense (D, 256) matmul.
    head = jnp.dot(joint, wheads_ref[...],
                   preferred_element_type=jnp.float32) + bheads_ref[...]
    qvec = jnp.tanh(head[:, 128:128 + Dq])                          # (B, Dq)

    # ---- qformer2.forward_llm ----------------------------------------------
    tq = tq_emb_ref[...].astype(jnp.float32)
    tmask = tq_mask_ref[...]
    tmsum = jnp.maximum(jnp.sum(tmask, axis=1, keepdims=True), 1.0)
    pooled = jnp.sum(tq * (tmask / tmsum)[:, :, None], axis=1)      # (B, D)

    ctx = qvec + jnp.dot(pooled, wtq_ref[...],
                         preferred_element_type=jnp.float32)        # (B, Dq)
    logits = jnp.dot(ctx, wllm_ref[...],
                     preferred_element_type=jnp.float32)            # (B, V)

    # cross-entropy-style loss vs target index 0: logsumexp - logit[0]
    mx = jnp.max(logits, axis=-1, keepdims=True)
    lse = mx[:, 0] + jnp.log(jnp.sum(jnp.exp(logits - mx), axis=-1))
    nll = lse - logits[:, 0]                                        # (B,)

    # ---- lane-dense packed output ------------------------------------------
    lane = jax.lax.broadcasted_iota(jnp.int32, (B, OUTW), 1)
    out = jnp.where(lane < 3, jax.nn.sigmoid(head[:, :OUTW]), 0.0)
    out = jnp.where(lane == 3, nll[:, None], out)
    out_ref[...] = out


def _full_spec(shape):
    # whole-array block (allowed even when dims are not (8,128) aligned)
    return pl.BlockSpec(shape, lambda i: (0,) * len(shape))


# ----------------------------------------------------------------------------
# JAX wrapper: layout transforms, embedding gathers, weight packing, rewards
# ----------------------------------------------------------------------------

def mintiqa_forward(batch_data, params, *, patch=4):
    img = batch_data["img"]                       # (B, 3, H, W)  NCHW
    text_ids = batch_data["text_ids"]             # (B, L) int32
    text_mask = batch_data["text_mask"]           # (B, L)
    tq_ids = batch_data["tq_ids"]                 # (B, L) int32
    tq_mask = batch_data["tq_mask"]               # (B, L)
    mos1 = batch_data["moz1"].astype(jnp.float32)
    mos2 = batch_data["moz2"].astype(jnp.float32)
    mos3 = batch_data["moz3"].astype(jnp.float32)

    B, C, H, W = img.shape
    L = text_ids.shape[1]
    p = patch
    P = (H // p) * (W // p)
    Cp = C * p * p
    assert Cp <= CP_PAD

    # NCHW -> (B, P, Cp) patch-major, feature-last, then mean over P in the
    # wrapper (mean commutes with the patch-embedding matmul), pad Cp -> 128.
    patches = img.reshape(B, C, H // p, p, W // p, p)
    patches = jnp.transpose(patches, (0, 2, 4, 1, 3, 5)).reshape(B, P, Cp)
    img_pooled = jnp.mean(patches.astype(jnp.float32), axis=1)      # (B, Cp)
    img_pooled = jnp.pad(img_pooled, ((0, 0), (0, CP_PAD - Cp)))
    img_pooled = img_pooled.astype(jnp.bfloat16)

    emb = params["emb"]                                             # (vocab, D)
    D = emb.shape[1]
    Dq = params["wq"].shape[1]
    V = params["wllm"].shape[1]
    assert Dq <= 128

    txt_emb = jnp.take(emb, text_ids, axis=0).astype(jnp.bfloat16)  # (B, L, D)
    tq_emb = jnp.take(emb, tq_ids, axis=0).astype(jnp.bfloat16)     # (B, L, D)

    # zero-pad the patch-embedding rows to the padded Cp
    wp_pad = jnp.pad(params["wp"], ((0, CP_PAD - Cp), (0, 0)))      # (128, D)

    # pack score heads (lanes 0..2) and quality-vector head (lanes 128..) into
    # a single lane-dense weight so the heads are one MXU matmul.
    wheads = jnp.zeros((D, HEADW), jnp.float32)
    wheads = wheads.at[:, 0:3].set(params["wscore"])
    wheads = wheads.at[:, 128:128 + Dq].set(params["wq"])
    bheads = jnp.zeros((1, HEADW), jnp.float32)
    bheads = bheads.at[:, 0:3].set(params["bscore"])

    out = pl.pallas_call(
        mintiqa_kernel,
        out_shape=jax.ShapeDtypeStruct((B, OUTW), jnp.float32),
        grid=(1,),
        in_specs=[_full_spec((B, CP_PAD)),
                  _full_spec((CP_PAD, D)),
                  _full_spec((B, L, D)),
                  _full_spec((B, L)),
                  _full_spec((D, D)),
                  _full_spec((D, HEADW)),
                  _full_spec((1, HEADW)),
                  _full_spec((B, L, D)),
                  _full_spec((B, L)),
                  _full_spec((D, Dq)),
                  _full_spec((Dq, V))],
        out_specs=_full_spec((B, OUTW)),
        compiler_params=pltpu.CompilerParams(
            dimension_semantics=("arbitrary",)),
    )(img_pooled, wp_pad, txt_emb, text_mask.astype(jnp.float32),
      params["wt"], wheads, bheads, tq_emb, tq_mask.astype(jnp.float32),
      params["wtq"], params["wllm"])

    score1 = out[:, 0]
    score2 = out[:, 1]
    score3 = out[:, 2]
    lossllm = jnp.mean(out[:, 3])

    # reward_k = concat(score_k[:, None], mos_k[:, None], dim=1) -> (B, 2)
    reward1 = jnp.concatenate((score1[:, None], mos1[:, None]), axis=1)
    reward2 = jnp.concatenate((score2[:, None], mos2[:, None]), axis=1)
    reward3 = jnp.concatenate((score3[:, None], mos3[:, None]), axis=1)
    return reward1, reward2, reward3, lossllm


# ----------------------------------------------------------------------------
# Deterministic parameter / input construction + smoke test
# ----------------------------------------------------------------------------

def make_params(key, *, Cp=48, D=128, Dq=128, vocab=64, Vllm=128):
    ks = jax.random.split(key, 7)
    s = lambda k, shape, scale: (scale * jax.random.normal(k, shape)).astype(
        jnp.float32)
    return {
        "emb":    s(ks[0], (vocab, D), 0.1),
        "wp":     s(ks[1], (Cp, D), 0.1),
        "wt":     s(ks[2], (D, D), 0.1),
        "wscore": s(ks[3], (D, 3), 0.1),
        "bscore": jnp.zeros((1, 3), jnp.float32),
        "wq":     s(ks[4], (D, Dq), 0.1),
        "wtq":    s(ks[5], (D, Dq), 0.1),
        "wllm":   s(ks[6], (Dq, Vllm), 0.1),
    }


if __name__ == "__main__":
    B, C, H, W = 2, 3, 16, 16
    L, vocab = 8, 64

    key = jax.random.PRNGKey(0)
    kp, ki, kt, ktq, km1, km2, km3 = jax.random.split(key, 7)

    params = make_params(kp, vocab=vocab)

    batch_data = {
        "img": jax.random.normal(ki, (B, C, H, W), dtype=jnp.float32),
        "text_ids": jax.random.randint(kt, (B, L), 0, vocab, dtype=jnp.int32),
        "text_mask": jnp.ones((B, L), jnp.float32),
        "tq_ids": jax.random.randint(ktq, (B, L), 0, vocab, dtype=jnp.int32),
        "tq_mask": jnp.ones((B, L), jnp.float32),
        "moz1": jax.random.uniform(km1, (B,), dtype=jnp.float32),
        "moz2": jax.random.uniform(km2, (B,), dtype=jnp.float32),
        "moz3": jax.random.uniform(km3, (B,), dtype=jnp.float32),
    }

    reward1, reward2, reward3, lossllm = mintiqa_forward(batch_data, params)
    jax.block_until_ready((reward1, reward2, reward3, lossllm))

    assert reward1.shape == (B, 2)
    assert reward2.shape == (B, 2)
    assert reward3.shape == (B, 2)
    assert lossllm.shape == ()
    assert bool(jnp.all(jnp.isfinite(reward1)))
    assert bool(jnp.isfinite(lossllm))
    print("KERNEL_OK")
</pallas_src>

<mosaic_0001>
module attributes {stable_mosaic.version = 11 : i64} {
  func.func @mintiqa_kernel(%arg0: i32, %arg1: memref<2x128xbf16, #tpu.memory_space<vmem>>, %arg2: memref<128x128xf32, #tpu.memory_space<vmem>>, %arg3: memref<2x8x128xbf16, #tpu.memory_space<vmem>>, %arg4: memref<2x8xf32, #tpu.memory_space<vmem>>, %arg5: memref<128x128xf32, #tpu.memory_space<vmem>>, %arg6: memref<128x256xf32, #tpu.memory_space<vmem>>, %arg7: memref<1x256xf32, #tpu.memory_space<vmem>>, %arg8: memref<2x8x128xbf16, #tpu.memory_space<vmem>>, %arg9: memref<2x8xf32, #tpu.memory_space<vmem>>, %arg10: memref<128x128xf32, #tpu.memory_space<vmem>>, %arg11: memref<128x128xf32, #tpu.memory_space<vmem>>, %arg12: memref<2x128xf32, #tpu.memory_space<vmem>>) attributes {dimension_semantics = [#tpu.dimension_semantics<arbitrary>], iteration_bounds = array<i64: 1>, scalar_prefetch = 0 : i64, scratch_operands = 0 : i64, tpu.core_type = #tpu.core_type<tc>, window_params = [{pipeline_mode = #tpu.pipeline_mode<synchronous>, transform_indices = @transform_0, window_bounds = array<i64: 2, 128>}, {pipeline_mode = #tpu.pipeline_mode<synchronous>, transform_indices = @transform_1, window_bounds = array<i64: 128, 128>}, {pipeline_mode = #tpu.pipeline_mode<synchronous>, transform_indices = @transform_2, window_bounds = array<i64: 2, 8, 128>}, {pipeline_mode = #tpu.pipeline_mode<synchronous>, transform_indices = @transform_3, window_bounds = array<i64: 2, 8>}, {pipeline_mode = #tpu.pipeline_mode<synchronous>, transform_indices = @transform_4, window_bounds = array<i64: 128, 128>}, {pipeline_mode = #tpu.pipeline_mode<synchronous>, transform_indices = @transform_5, window_bounds = array<i64: 128, 256>}, {pipeline_mode = #tpu.pipeline_mode<synchronous>, transform_indices = @transform_6, window_bounds = array<i64: 1, 256>}, {pipeline_mode = #tpu.pipeline_mode<synchronous>, transform_indices = @transform_7, window_bounds = array<i64: 2, 8, 128>}, {pipeline_mode = #tpu.pipeline_mode<synchronous>, transform_indices = @transform_8, window_bounds = array<i64: 2, 8>}, {pipeline_mode = #tpu.pipeline_mode<synchronous>, transform_indices = @transform_9, window_bounds = array<i64: 128, 128>}, {pipeline_mode = #tpu.pipeline_mode<synchronous>, transform_indices = @transform_10, window_bounds = array<i64: 128, 128>}, {pipeline_mode = #tpu.pipeline_mode<synchronous>, transform_indices = @transform_11, window_bounds = array<i64: 2, 128>}]} {
    %c0 = arith.constant 0 : index
    %c0_0 = arith.constant 0 : index
    %0 = vector.load %arg1[%c0, %c0_0] : memref<2x128xbf16, #tpu.memory_space<vmem>>, vector<2x128xbf16>
    %1 = arith.extf %0 : vector<2x128xbf16> to vector<2x128xf32>
    %c0_1 = arith.constant 0 : index
    %c0_2 = arith.constant 0 : index
    %2 = vector.load %arg2[%c0_1, %c0_2] : memref<128x128xf32, #tpu.memory_space<vmem>>, vector<128x128xf32>
    %cst = arith.constant dense<0.000000e+00> : vector<2x128xf32>
    %3 = tpu.matmul %1, %2, %cst {dimension_numbers = #tpu.dot_dimension_numbers<[1], [0], [0], [1], [0, 0, 1, 1], [], []>} : vector<2x128xf32>, vector<128x128xf32>, vector<2x128xf32> -> vector<2x128xf32>
    %c0_3 = arith.constant 0 : index
    %c0_4 = arith.constant 0 : index
    %c0_5 = arith.constant 0 : index
    %4 = vector.load %arg3[%c0_3, %c0_4, %c0_5] : memref<2x8x128xbf16, #tpu.memory_space<vmem>>, vector<2x8x128xbf16>
    %5 = arith.extf %4 : vector<2x8x128xbf16> to vector<2x8x128xf32>
    %c0_6 = arith.constant 0 : index
    %c0_7 = arith.constant 0 : index
    %6 = vector.load %arg4[%c0_6, %c0_7] : memref<2x8xf32, #tpu.memory_space<vmem>>, vector<2x8xf32>
    %cst_8 = arith.constant dense<0.000000e+00> : vector<2xf32>
    %7 = vector.multi_reduction <add>, %6, %cst_8 [1] : vector<2x8xf32> to vector<2xf32>
    %8 = vector.shape_cast %7 : vector<2xf32> to vector<2x1xf32>
    %cst_9 = arith.constant 1.000000e+00 : f32
    %9 = vector.broadcast %cst_9 : f32 to vector<2x1xf32>
    %10 = arith.maximumf %8, %9 : vector<2x1xf32>
    %11 = vector.broadcast %10 : vector<2x1xf32> to vector<2x8xf32>
    %12 = arith.divf %6, %11 : vector<2x8xf32>
    %13 = vector.shape_cast %12 : vector<2x8xf32> to vector<2x8x1xf32>
    %14 = vector.broadcast %13 : vector<2x8x1xf32> to vector<2x8x128xf32>
    %15 = arith.mulf %5, %14 : vector<2x8x128xf32>
    %cst_10 = arith.constant dense<0.000000e+00> : vector<2x128xf32>
    %16 = vector.multi_reduction <add>, %15, %cst_10 [1] : vector<2x8x128xf32> to vector<2x128xf32>
    %c0_11 = arith.constant 0 : index
    %c0_12 = arith.constant 0 : index
    %17 = vector.load %arg5[%c0_11, %c0_12] : memref<128x128xf32, #tpu.memory_space<vmem>>, vector<128x128xf32>
    %cst_13 = arith.constant dense<0.000000e+00> : vector<2x128xf32>
    %18 = tpu.matmul %16, %17, %cst_13 {dimension_numbers = #tpu.dot_dimension_numbers<[1], [0], [0], [1], [0, 0, 1, 1], [], []>} : vector<2x128xf32>, vector<128x128xf32>, vector<2x128xf32> -> vector<2x128xf32>
    %19 = arith.mulf %3, %18 : vector<2x128xf32>
    %c0_14 = arith.constant 0 : index
    %c0_15 = arith.constant 0 : index
    %20 = vector.load %arg6[%c0_14, %c0_15] : memref<128x256xf32, #tpu.memory_space<vmem>>, vector<128x256xf32>
    %cst_16 = arith.constant dense<0.000000e+00> : vector<2x256xf32>
    %21 = tpu.matmul %19, %20, %cst_16 {dimension_numbers = #tpu.dot_dimension_numbers<[1], [0], [0], [1], [0, 0, 1, 1], [], []>} : vector<2x128xf32>, vector<128x256xf32>, vector<2x256xf32> -> vector<2x256xf32>
    %c0_17 = arith.constant 0 : index
    %c0_18 = arith.constant 0 : index
    %22 = vector.load %arg7[%c0_17, %c0_18] : memref<1x256xf32, #tpu.memory_space<vmem>>, vector<1x256xf32>
    %23 = vector.broadcast %22 : vector<1x256xf32> to vector<2x256xf32>
    %24 = arith.addf %21, %23 : vector<2x256xf32>
    %25 = vector.extract_strided_slice %24 {offsets = [0, 128], sizes = [2, 128], strides = [1, 1]} : vector<2x256xf32> to vector<2x128xf32>
    %26 = math.tanh %25 : vector<2x128xf32>
    %c0_19 = arith.constant 0 : index
    %c0_20 = arith.constant 0 : index
    %c0_21 = arith.constant 0 : index
    %27 = vector.load %arg8[%c0_19, %c0_20, %c0_21] : memref<2x8x128xbf16, #tpu.memory_space<vmem>>, vector<2x8x128xbf16>
    %28 = arith.extf %27 : vector<2x8x128xbf16> to vector<2x8x128xf32>
    %c0_22 = arith.constant 0 : index
    %c0_23 = arith.constant 0 : index
    %29 = vector.load %arg9[%c0_22, %c0_23] : memref<2x8xf32, #tpu.memory_space<vmem>>, vector<2x8xf32>
    %cst_24 = arith.constant dense<0.000000e+00> : vector<2xf32>
    %30 = vector.multi_reduction <add>, %29, %cst_24 [1] : vector<2x8xf32> to vector<2xf32>
    %31 = vector.shape_cast %30 : vector<2xf32> to vector<2x1xf32>
    %cst_25 = arith.constant 1.000000e+00 : f32
    %32 = vector.broadcast %cst_25 : f32 to vector<2x1xf32>
    %33 = arith.maximumf %31, %32 : vector<2x1xf32>
    %34 = vector.broadcast %33 : vector<2x1xf32> to vector<2x8xf32>
    %35 = arith.divf %29, %34 : vector<2x8xf32>
    %36 = vector.shape_cast %35 : vector<2x8xf32> to vector<2x8x1xf32>
    %37 = vector.broadcast %36 : vector<2x8x1xf32> to vector<2x8x128xf32>
    %38 = arith.mulf %28, %37 : vector<2x8x128xf32>
    %cst_26 = arith.constant dense<0.000000e+00> : vector<2x128xf32>
    %39 = vector.multi_reduction <add>, %38, %cst_26 [1] : vector<2x8x128xf32> to vector<2x128xf32>
    %c0_27 = arith.constant 0 : index
    %c0_28 = arith.constant 0 : index
    %40 = vector.load %arg10[%c0_27, %c0_28] : memref<128x128xf32, #tpu.memory_space<vmem>>, vector<128x128xf32>
    %cst_29 = arith.constant dense<0.000000e+00> : vector<2x128xf32>
    %41 = tpu.matmul %39, %40, %cst_29 {dimension_numbers = #tpu.dot_dimension_numbers<[1], [0], [0], [1], [0, 0, 1, 1], [], []>} : vector<2x128xf32>, vector<128x128xf32>, vector<2x128xf32> -> vector<2x128xf32>
    %42 = arith.addf %26, %41 : vector<2x128xf32>
    %c0_30 = arith.constant 0 : index
    %c0_31 = arith.constant 0 : index
    %43 = vector.load %arg11[%c0_30, %c0_31] : memref<128x128xf32, #tpu.memory_space<vmem>>, vector<128x128xf32>
    %cst_32 = arith.constant dense<0.000000e+00> : vector<2x128xf32>
    %44 = tpu.matmul %42, %43, %cst_32 {dimension_numbers = #tpu.dot_dimension_numbers<[1], [0], [0], [1], [0, 0, 1, 1], [], []>} : vector<2x128xf32>, vector<128x128xf32>, vector<2x128xf32> -> vector<2x128xf32>
    %cst_33 = arith.constant dense<0xFF800000> : vector<2xf32>
    %45 = vector.multi_reduction <maximumf>, %44, %cst_33 [1] : vector<2x128xf32> to vector<2xf32>
    %46 = vector.shape_cast %45 : vector<2xf32> to vector<2x1xf32>
    %47 = vector.shape_cast %46 : vector<2x1xf32> to vector<2xf32>
    %48 = vector.broadcast %46 : vector<2x1xf32> to vector<2x128xf32>
    %49 = arith.subf %44, %48 : vector<2x128xf32>
    %50 = math.exp %49 : vector<2x128xf32>
    %cst_34 = arith.constant dense<0.000000e+00> : vector<2xf32>
    %51 = vector.multi_reduction <add>, %50, %cst_34 [1] : vector<2x128xf32> to vector<2xf32>
    %52 = math.log %51 : vector<2xf32>
    %53 = arith.addf %47, %52 : vector<2xf32>
    %54 = vector.extract_strided_slice %44 {offsets = [0, 0], sizes = [2, 1], strides = [1, 1]} : vector<2x128xf32> to vector<2x1xf32>
    %55 = vector.shape_cast %54 : vector<2x1xf32> to vector<2xf32>
    %56 = arith.subf %53, %55 : vector<2xf32>
    %57 = tpu.iota {dimensions = array<i32: 1>} : vector<2x128xi32>
    %c3_i32 = arith.constant 3 : i32
    %58 = vector.broadcast %c3_i32 : i32 to vector<2x128xi32>
    %59 = arith.cmpi slt, %57, %58 : vector<2x128xi32>
    %60 = vector.extract_strided_slice %24 {offsets = [0, 0], sizes = [2, 128], strides = [1, 1]} : vector<2x256xf32> to vector<2x128xf32>
    %61 = arith.negf %60 : vector<2x128xf32>
    %62 = math.exp %61 : vector<2x128xf32>
    %cst_35 = arith.constant 1.000000e+00 : f32
    %63 = vector.broadcast %cst_35 : f32 to vector<2x128xf32>
    %64 = arith.addf %63, %62 : vector<2x128xf32>
    %65 = arith.divf %63, %64 : vector<2x128xf32>
    %cst_36 = arith.constant 0.000000e+00 : f32
    %66 = vector.broadcast %cst_36 : f32 to vector<2x128xf32>
    %67 = arith.select %59, %65, %66 : vector<2x128xi1>, vector<2x128xf32>
    %c3_i32_37 = arith.constant 3 : i32
    %68 = vector.broadcast %c3_i32_37 : i32 to vector<2x128xi32>
    %69 = arith.cmpi eq, %57, %68 : vector<2x128xi32>
    %70 = vector.shape_cast %56 : vector<2xf32> to vector<2x1xf32>
    %71 = vector.shape_cast %70 : vector<2x1xf32> to vector<2x1xf32>
    %72 = vector.broadcast %71 : vector<2x1xf32> to vector<2x128xf32>
    %73 = arith.select %69, %72, %67 : vector<2x128xi1>, vector<2x128xf32>
    %c0_38 = arith.constant 0 : index
    %c0_39 = arith.constant 0 : index
    %74 = vector.load %arg12[%c0_38, %c0_39] : memref<2x128xf32, #tpu.memory_space<vmem>>, vector<2x128xf32>
    tpu.vector_store %arg12[%c0_38, %c0_39], %73 {strides = array<i32>} : memref<2x128xf32, #tpu.memory_space<vmem>>, vector<2x128xf32>,
    return
  }
  func.func @transform_0(%arg0: i32) -> (i32, i32) {
    %c0_i32 = arith.constant 0 : i32
    %c0_i32_0 = arith.constant 0 : i32
    %c0_i32_1 = arith.constant 0 : i32
    return %c0_i32, %c0_i32_0 : i32, i32
  }
  func.func @transform_1(%arg0: i32) -> (i32, i32) {
    %c0_i32 = arith.constant 0 : i32
    %c0_i32_0 = arith.constant 0 : i32
    %c0_i32_1 = arith.constant 0 : i32
    return %c0_i32, %c0_i32_0 : i32, i32
  }
  func.func @transform_2(%arg0: i32) -> (i32, i32, i32) {
    %c0_i32 = arith.constant 0 : i32
    %c0_i32_0 = arith.constant 0 : i32
    %c0_i32_1 = arith.constant 0 : i32
    %c0_i32_2 = arith.constant 0 : i32
    return %c0_i32, %c0_i32_0, %c0_i32_1 : i32, i32, i32
  }
  func.func @transform_3(%arg0: i32) -> (i32, i32) {
    %c0_i32 = arith.constant 0 : i32
    %c0_i32_0 = arith.constant 0 : i32
    %c0_i32_1 = arith.constant 0 : i32
    return %c0_i32, %c0_i32_0 : i32, i32
  }
  func.func @transform_4(%arg0: i32) -> (i32, i32) {
    %c0_i32 = arith.constant 0 : i32
    %c0_i32_0 = arith.constant 0 : i32
    %c0_i32_1 = arith.constant 0 : i32
    return %c0_i32, %c0_i32_0 : i32, i32
  }
  func.func @transform_5(%arg0: i32) -> (i32, i32) {
    %c0_i32 = arith.constant 0 : i32
    %c0_i32_0 = arith.constant 0 : i32
    %c0_i32_1 = arith.constant 0 : i32
    return %c0_i32, %c0_i32_0 : i32, i32
  }
  func.func @transform_6(%arg0: i32) -> (i32, i32) {
    %c0_i32 = arith.constant 0 : i32
    %c0_i32_0 = arith.constant 0 : i32
    %c0_i32_1 = arith.constant 0 : i32
    return %c0_i32, %c0_i32_0 : i32, i32
  }
  func.func @transform_7(%arg0: i32) -> (i32, i32, i32) {
    %c0_i32 = arith.constant 0 : i32
    %c0_i32_0 = arith.constant 0 : i32
    %c0_i32_1 = arith.constant 0 : i32
    %c0_i32_2 = arith.constant 0 : i32
    return %c0_i32, %c0_i32_0, %c0_i32_1 : i32, i32, i32
  }
  func.func @transform_8(%arg0: i32) -> (i32, i32) {
    %c0_i32 = arith.constant 0 : i32
    %c0_i32_0 = arith.constant 0 : i32
    %c0_i32_1 = arith.constant 0 : i32
    return %c0_i32, %c0_i32_0 : i32, i32
  }
  func.func @transform_9(%arg0: i32) -> (i32, i32) {
    %c0_i32 = arith.constant 0 : i32
    %c0_i32_0 = arith.constant 0 : i32
    %c0_i32_1 = arith.constant 0 : i32
    return %c0_i32, %c0_i32_0 : i32, i32
  }
  func.func @transform_10(%arg0: i32) -> (i32, i32) {
    %c0_i32 = arith.constant 0 : i32
    %c0_i32_0 = arith.constant 0 : i32
    %c0_i32_1 = arith.constant 0 : i32
    return %c0_i32, %c0_i32_0 : i32, i32
  }
  func.func @transform_11(%arg0: i32) -> (i32, i32) {
    %c0_i32 = arith.constant 0 : i32
    %c0_i32_0 = arith.constant 0 : i32
    %c0_i32_1 = arith.constant 0 : i32
    return %c0_i32, %c0_i32_0 : i32, i32
  }
}

</mosaic_0001>

<bundles_post_ra>
// kernel: tpu_custom_call.1
= control target key start
LH: loop header
LB: loop body
LE: loop exit
PB: predicated region body
PF: predicated region fallthrough
CT: control target
= control target key end

     0   :  { %16 = vsyncpa [#allocation3], 0  ;;  %s975_s0 = inlined_call_operand.hbm [shape: bf16[2,128], index: 0, kind: input, shape index: {}]   ;;  %s976_s1 = inlined_call_operand.hbm [shape: f32[128,128], index: 1, kind: input, shape index: {}]   ;;  %s977_s2 = inlined_call_operand.hbm [shape: bf16[2,8,128], index: 2, kind: input, shape index: {}]   ;;  %s978_s3 = inlined_call_operand.vmem [shape: f32[2,8], index: 3, kind: input, shape index: {}]   ;;  %s979_s4 = inlined_call_operand.hbm [shape: f32[128,128], index: 4, kind: input, shape index: {}]   ;;  %s980_s5 = inlined_call_operand.hbm [shape: f32[128,256], index: 5, kind: input, shape index: {}]   ;;  %s981_s6 = inlined_call_operand.vmem [shape: f32[1,256], index: 6, kind: input, shape index: {}]   ;;  %s982_s7 = inlined_call_operand.hbm [shape: bf16[2,8,128], index: 7, kind: input, shape index: {}]   ;;  %s983_s8 = inlined_call_operand.vmem [shape: f32[2,8], index: 8, kind: input, shape index: {}]   ;;  %s984_s9 = inlined_call_operand.hbm [shape: f32[128,128], index: 9, kind: input, shape index: {}]   ;;  %s985_s10 = inlined_call_operand.hbm [shape: f32[128,128], index: 10, kind: input, shape index: {}]   ;;  %s986_s11 = inlined_call_operand.hbm [shape: f32[2,128], index: 11, kind: output, shape index: {}]  }
   0x1   :  { %17 = vsyncpa [#allocation6], 0 }
   0x2   :  { %18 = vsyncpa [#allocation9], 0 }
   0x3   :  { %19 = vsyncpa [#allocation12], 0 }
   0x4   :  { %20 = vsyncpa [#allocation15], 0  ;;  %s37_s19 = sshll.u32 %s976_s1, 4  ;;  %s38_s19 = int_to_ptr.hbm [resolvable:$true] %s37_s19 }
   0x5   :  { %21 = vsyncpa [#allocation4], 0  ;;  %s841_s20 = smov [#allocation5]   ;;  %s65_s24 = sshll.u32 %s979_s4, 4  ;;  %s66_s24 = int_to_ptr.hbm [resolvable:$true] %s65_s24 }
   0x6   :  { %s39_s21 = sshll.u32 %s841_s20, 4  ;;  %s842_s25 = smov 128   ;;  %s40_s21 = int_to_ptr.vmem [resolvable:$true] %s39_s21 }
   0x7   :  { %s843_s26 = smov 8   ;;  %s844_s27 = smov [#allocation8]  }
   0x8   :  { %45 = dma.hbm_to_vmem [thread:$0]  %s38_s19, 2048, %s40_s21, [#allocation6], %s842_s25, %s842_s25, %s843_s26  }
   0x9   :  { %s67_s28 = sshll.u32 %s844_s27, 4  ;;  %s93_s30 = sshll.u32 %s982_s7, 4  ;;  %s68_s28 = int_to_ptr.vmem [resolvable:$true] %s67_s28  ;;  %s94_s30 = int_to_ptr.hbm [resolvable:$true] %s93_s30 }
   0xa   :  { %73 = dma.hbm_to_vmem [thread:$0]  %s66_s24, 2048, %s68_s28, [#allocation9], %s842_s25, %s842_s25, %s843_s26  }
   0xb   :  { %s845_s4 = smov [#allocation11]   ;;  %s27_s15 = sshll.u32 %s975_s0, 4  ;;  %s28_s15 = int_to_ptr.hbm [resolvable:$true] %s27_s15 }
   0xc   :  { %s95_s12 = sshll.u32 %s845_s4, 4  ;;  %s846_s16 = smov 64   ;;  %s96_s12 = int_to_ptr.vmem [resolvable:$true] %s95_s12 }
   0xd   :  { %s847_s17 = smov 4   ;;  %s848_s18 = smov [#allocation2]  }
   0xe   :  { %101 = dma.hbm_to_vmem [thread:$0]  %s94_s30, 128, %s96_s12, [#allocation12], %s846_s16, %s846_s16, %s847_s17  }
   0xf   :  { %s29_s19 = sshll.u32 %s848_s18, 4  ;;  %s50_s22 = sshll.u32 %s977_s2, 4  ;;  %s30_s19 = int_to_ptr.vmem [resolvable:$true] %s29_s19  ;;  %s51_s22 = int_to_ptr.hbm [resolvable:$true] %s50_s22 }
  0x10   :  { %32 = dma.hbm_to_vmem [thread:$0]  %s28_s15, 16, %s30_s19, [#allocation3]  }
  0x11   :  { %s78_s24 = sshll.u32 %s980_s5, 4  ;;  %s849_s27 = smov [#allocation7]   ;;  %s79_s24 = int_to_ptr.hbm [resolvable:$true] %s78_s24 }
  0x12   :  { %s52_s28 = sshll.u32 %s849_s27, 4  ;;  %s850_s0 = smov [#allocation10]   ;;  %s53_s28 = int_to_ptr.vmem [resolvable:$true] %s52_s28 }
  0x13   :  { %58 = dma.hbm_to_vmem [thread:$0]  %s51_s22, 128, %s53_s28, [#allocation6], %s846_s16, %s846_s16, %s847_s17  }
  0x14   :  { %s80_s1 = sshll.u32 %s850_s0, 4  ;;  %s851_s29 = smov 256   ;;  %s81_s1 = int_to_ptr.vmem [resolvable:$true] %s80_s1 }
  0x15   :  { %s852_s30 = smov 16   ;;  %s108_s12 = sshll.u32 %s984_s9, 4  ;;  %s109_s12 = int_to_ptr.hbm [resolvable:$true] %s108_s12 }
  0x16   :  { %86 = dma.hbm_to_vmem [thread:$0]  %s79_s24, 4096, %s81_s1, [#allocation9], %s851_s29, %s851_s29, %s852_s30  }
  0x17   :  { %s853_s13 = smov [#allocation13]   ;;  %s121_s18 = sshll.u32 %s985_s10, 4  ;;  %s122_s18 = int_to_ptr.hbm [resolvable:$true] %s121_s18 }
  0x18   :  { %s110_s14 = sshll.u32 %s853_s13, 4  ;;  %s854_s16 = smov [#allocation14]   ;;  %s111_s14 = int_to_ptr.vmem [resolvable:$true] %s110_s14 }
  0x19   :  { %116 = dma.hbm_to_vmem [thread:$0]  %s109_s12, 2048, %s111_s14, [#allocation12], %s842_s25, %s842_s25, %s843_s26  }
  0x1a   :  { %s123_s17 = sshll.u32 %s854_s16, 4  ;;  %s124_s17 = int_to_ptr.vmem [resolvable:$true] %s123_s17 }
  0x1b   :  { %129 = dma.hbm_to_vmem [thread:$0]  %s122_s18, 2048, %s124_s17, [#allocation15], %s842_s25, %s842_s25, %s843_s26  }
  0x1c   :  { %829 = dma.done.wait [#allocation3], 16  }
  0x1d   :  { %830 = vsyncadd [#allocation3], 4294967280 }
  0x1e   :  { %831 = dma.done.wait [#allocation6], 2176  }
  0x1f   :  { %832 = vsyncadd [#allocation6], 4294965120 }
  0x20   :  { %833 = dma.done.wait [#allocation9], 6144  }
  0x21   :  { %834 = vsyncadd [#allocation9], 4294961152 }
  0x22   :  { %835 = dma.done.wait [#allocation12], 2176  }
  0x23   :  { %836 = vsyncadd [#allocation12], 4294965120 }
  0x24   :  { %837 = dma.done.wait [#allocation15], 2048  }
  0x25   :  { %838 = vsyncadd [#allocation15], 4294965248  ;;  %vm205_vm0 = vcmask 58368   ;;  %v204_v0 = vld [vmem:[%s978_s3] sm:$0x3]  ;;  %v226_v2 = vlaneseq  ;;  %v268_v20 = vld [vmem:[#allocation8 + $0x78] sm:$0xff] }
  0x26   :  { %v206_v1 = vsel %vm205_vm0, %v204_v0, 0.0  ;;  %v179_v19 = vld [vmem:[#allocation5 + $0x78] sm:$0xff]  ;;  %v178_v21 = vld [vmem:[#allocation5 + $0x70] sm:$0xff]  ;;  %274 = vmatpush.msra.mxu1 %v268_v20  ;;  %v177_v23 = vld [vmem:[#allocation5 + $0x68] sm:$0xff]  ;;  %vm271_vm5 = vcmask 1041409   ;;  %vm503_vm10 = vcmask 1041408  }
  0x27   :  { %207 = vadd.xlane.f32.xlu0 %v206_v1  ;;  %v227_v3 = vshrl.u32 %v226_v2, 7  ;;  %180 = vmatpush.msra.mxu0 %v179_v19  ;;  %v267_v22 = vld [vmem:[#allocation8 + $0x70] sm:$0xff]  ;;  %v266_v24 = vld [vmem:[#allocation8 + $0x68] sm:$0xff]  ;;  %v176_v25 = vld [vmem:[#allocation5 + $0x60] sm:$0xff]  ;;  %s555_s22 = sshll.u32 %s986_s11, 4  ;;  %s556_s22 = int_to_ptr.hbm [resolvable:$true] %s555_s22 }
  0x28   :  { %275 = vmatpush.msra.mxu1 %v267_v22  ;;  %v265_v26 = vld [vmem:[#allocation8 + $0x60] sm:$0xff]  ;;  %v175_v27 = vld [vmem:[#allocation5 + $0x58] sm:$0xff]  ;;  %v264_v28 = vld [vmem:[#allocation8 + $0x58] sm:$0xff] }
  0x29   :  { %595 = vset.pattern.permute.xlu1 %v227_v3  ;;  %594 = vset.pattern.permute.xlu0 %v227_v3  ;;  %v174_v29 = vld [vmem:[#allocation5 + $0x50] sm:$0xff]  ;;  %v263_v30 = vld [vmem:[#allocation8 + $0x50] sm:$0xff]  ;;  %v173_v31 = vld [vmem:[#allocation5 + $0x48] sm:$0xff] }
  0x2a   :  { %596 = vset.pattern.permute.xlu2 %v227_v3  ;;  %181 = vmatpush.msra.mxu0 %v178_v21  ;;  %v262_v32 = vld [vmem:[#allocation8 + $0x48] sm:$0xff]  ;;  %v172_v33 = vld [vmem:[#allocation5 + $0x40] sm:$0xff]  ;;  %v261_v34 = vld [vmem:[#allocation8 + $0x40] sm:$0xff] }
  0x2b   :  { %276 = vmatpush.msra.mxu1 %v266_v24  ;;  %v961_v35 = vld [vmem:[%s983_s8] sm:$0x3]  ;;  %v260_v38 = vld [vmem:[#allocation8 + $0x38] sm:$0xff]  ;;  %v170_v39 = vld [vmem:[#allocation5 + $0x30] sm:$0xff] }
  0x2c   :  { %182 = vmatpush.msra.mxu0 %v177_v23  ;;  %v379_v36 = vsel %vm205_vm0, %v961_v35, 0.0  ;;  %v171_v37 = vld [vmem:[#allocation5 + $0x38] sm:$0xff]  ;;  %v169_v41 = vld [vmem:[#allocation5 + $0x28] sm:$0xff]  ;;  %v258_v42 = vld [vmem:[#allocation8 + $0x28] sm:$0xff] }
  0x2d   :  { %277 = vmatpush.msra.mxu1 %v265_v26  ;;  %v259_v40 = vld [vmem:[#allocation8 + $0x30] sm:$0xff]  ;;  %v168_v43 = vld [vmem:[#allocation5 + $0x20] sm:$0xff]  ;;  %v257_v44 = vld [vmem:[#allocation8 + $0x20] sm:$0xff] }
  0x2e   :  { %183 = vmatpush.msra.mxu0 %v176_v25  ;;  %v167_v45 = vld [vmem:[#allocation5 + $0x18] sm:$0xff]  ;;  %v256_v46 = vld [vmem:[#allocation8 + $0x18] sm:$0xff]  ;;  %v166_v47 = vld [vmem:[#allocation5 + $0x10] sm:$0xff] }
  0x2f   :  { %278 = vmatpush.msra.mxu1 %v264_v28  ;;  %v255_v48 = vld [vmem:[#allocation8 + $0x10] sm:$0xff]  ;;  %v165_v49 = vld [vmem:[#allocation5 + $0x8] sm:$0xff]  ;;  %v254_v50 = vld [vmem:[#allocation8 + $0x8] sm:$0xff] }
  0x30   :  { %184 = vmatpush.msra.mxu0 %v175_v27  ;;  %v164_v51 = vld [vmem:[#allocation5] sm:$0xff]  ;;  %v253_v52 = vld [vmem:[#allocation8] sm:$0xff]  ;;  %v162_v53 = vld [vmem:[#allocation2] sm:$0x1] }
  0x31   :  { %279 = vmatpush.msra.mxu1 %v263_v30  ;;  %v163_v54 = vunpack.c.l.bf16 %v162_v53  ;;  %v571_v55 = vld [vmem:[#allocation7] sm:$0xff]   ;;  %v319_v20 = vld [vmem:[#allocation10 + $0xc0] sm:$0xff]  ;;  %v320_v21 = vld [vmem:[#allocation10 + $0xc8] sm:$0xff] }
  0x32   :  { %185 = vmatpush.msra.mxu0 %v174_v29  ;;  %v573_v56 = vunpack.c.h.bf16 %v571_v55  ;;  %v572_v57 = vunpack.c.l.bf16 %v571_v55  ;;  %v322_v19 = vld [vmem:[#allocation10 + $0xd8] sm:$0xff]  ;;  %v317_v22 = vld [vmem:[#allocation10 + $0xb0] sm:$0xff]  ;;  %v315_v24 = vld [vmem:[#allocation10 + $0xa0] sm:$0xff] }
  0x33   :  { %280 = vmatpush.msra.mxu1 %v262_v32  ;;  %v318_v23 = vld [vmem:[#allocation10 + $0xb8] sm:$0xff]  ;;  %v316_v25 = vld [vmem:[#allocation10 + $0xa8] sm:$0xff]  ;;  %v313_v28 = vld [vmem:[#allocation10 + $0x90] sm:$0xff] }
  0x34   :  { %186 = vmatpush.msra.mxu0 %v173_v31  ;;  %v314_v29 = vld [vmem:[#allocation10 + $0x98] sm:$0xff]  ;;  %v311_v31 = vld [vmem:[#allocation10 + $0x80] sm:$0xff]  ;;  %v312_v32 = vld [vmem:[#allocation10 + $0x88] sm:$0xff] }
  0x35   :  { %281 = vmatpush.msra.mxu1 %v261_v34  ;;  %v299_v53 = vld [vmem:[#allocation10 + $0x20] sm:$0xff] }
  0x36   :  { %187 = vmatpush.msra.mxu0 %v172_v33 }
  0x37   :  { %282 = vmatpush.msra.mxu1 %v260_v38  ;;  %v310_v38 = vld [vmem:[#allocation10 + $0x78] sm:$0xff] }
  0x38   :  { %188 = vmatpush.msra.mxu0 %v171_v37  ;;  %v309_v37 = vld [vmem:[#allocation10 + $0x70] sm:$0xff] }
  0x39   :  { %283 = vmatpush.msra.mxu1 %v259_v40  ;;  %v307_v40 = vld [vmem:[#allocation10 + $0x60] sm:$0xff] }
  0x3a   :  { %189 = vmatpush.msra.mxu0 %v170_v39 }
  0x3b   :  { %284 = vmatpush.msra.mxu1 %v258_v42 }
  0x3c   :  { %190 = vmatpush.msra.mxu0 %v169_v41  ;;  %v308_v41 = vld [vmem:[#allocation10 + $0x68] sm:$0xff] }
  0x3d   :  { %285 = vmatpush.msra.mxu1 %v257_v44  ;;  %v305_v44 = vld [vmem:[#allocation10 + $0x50] sm:$0xff] }
  0x3e   :  { %191 = vmatpush.msra.mxu0 %v168_v43 }
  0x3f   :  { %286 = vmatpush.msra.mxu1 %v256_v46 }
  0x40   :  { %192 = vmatpush.msra.mxu0 %v167_v45  ;;  %v306_v45 = vld [vmem:[#allocation10 + $0x58] sm:$0xff] }
  0x41   :  { %287 = vmatpush.msra.mxu1 %v255_v48  ;;  %v303_v48 = vld [vmem:[#allocation10 + $0x40] sm:$0xff] }
  0x42   :  { %193 = vmatpush.msra.mxu0 %v166_v47 }
  0x43   :  { %288 = vmatpush.msra.mxu1 %v254_v50 }
  0x44   :  { %194 = vmatpush.msra.mxu0 %v165_v49  ;;  %v304_v49 = vld [vmem:[#allocation10 + $0x48] sm:$0xff] }
  0x45   :  { %289 = vmatpush.msra.mxu1 %v253_v52  ;;  %v302_v52 = vld [vmem:[#allocation10 + $0x38] sm:$0xff] }
  0x46   :  { %195 = vmatpush.msra.mxu0 %v164_v51  ;;  %v301_v51 = vld [vmem:[#allocation10 + $0x30] sm:$0xff] }
  0x47   :  { %196 = vmatmul.f32.vlgmr.msra.gmra.mxu0 %v163_v54  ;;  %v300_v54 = vld [vmem:[#allocation10 + $0x28] sm:$0xff] }
  0x9a   :  { %v208_v4 = vpop.xlane.xlu0 %207 }
  0x9b   :  { %v209_v5 = vmax.f32 %v208_v4, 1.0 }
  0x9d   :  { %599 = vrcp.f32 %v209_v5  ;;  %v221_v9 = vand.u32 2147483648, %v209_v5  ;;  %v219_v11 = vand.u32 2147483647, %v209_v5  ;;  %vm215_vm2 = vweird.f32 %v209_v5 }
  0x9f   :  { %v222_v13 = vor.u32 1.1754944e-38, %v221_v9  ;;  %vm220_vm4 = vcmp.eq.f32.partialorder %v219_v11, 8.507059e+37 }
  0xa3   :  { %v600_v6 = vpop.eup %599 }
  0xa4   :  { %v211_v7 = vmul.f32 %v600_v6, %v209_v5  ;;  %vm216_vm1 = vweird.f32 %v600_v6 }
  0xa5   :  { %vm217_vm3 = vmor %vm215_vm2, %vm216_vm1 }
  0xa6   :  { %v212_v8 = vsub.f32 1.0, %v211_v7 }
  0xa8   :  { %v213_v10 = vmul.f32 %v600_v6, %v212_v8 }
  0xaa   :  { %v214_v12 = vadd.f32 %v600_v6, %v213_v10 }
  0xac   :  { %v218_v14 = vsel %vm217_vm3, %v600_v6, %v214_v12 }
  0xad   :  { %v223_v15 = vsel %vm220_vm4, %v222_v13, %v218_v14  ;;  %v325_v13 = vld [vmem:[#allocation10 + $0xf0] sm:$0xff]  ;;  %v326_v14 = vld [vmem:[#allocation10 + $0xf8] sm:$0xff] }
  0xae   :  { %v224_v16 = vmul.f32 %v223_v15, %v204_v0  ;;  %v323_v15 = vld [vmem:[#allocation10 + $0xe0] sm:$0xff]  ;;  %333 = vmatpush.msra.mxu2 %v325_v13  ;;  %353 = vmatpush.msra.mxu3 %v326_v14  ;;  %v427_v13 = vld [vmem:[#allocation13 + $0x8] sm:$0xff]  ;;  %v426_v14 = vld [vmem:[#allocation13] sm:$0xff] }
  0xb0   :  { %v232_v17 = vperm.slane %v224_v16, 1  ;;  %v225_v18 = vperm.slane %v224_v16, 0  ;;  %334 = vmatpush.msra.mxu2 %v323_v15  ;;  %v575_v15 = vld [vmem:[#allocation11] sm:$0xff]  }
  0xb2   :  { %237 = vperm.xlu1 %595, %v232_v17   ;;  %230 = vperm.xlu0 %594, %v225_v18   ;;  %v324_v17 = vld [vmem:[#allocation10 + $0xe8] sm:$0xff]  ;;  %v321_v18 = vld [vmem:[#allocation10 + $0xd0] sm:$0xff] }
  0xb3   :  { %354 = vmatpush.msra.mxu3 %v324_v17  ;;  %335 = vmatpush.msra.mxu2 %v321_v18 }
  0xb5   :  { %355 = vmatpush.msra.mxu3 %v322_v19  ;;  %336 = vmatpush.msra.mxu2 %v319_v20 }
  0xb7   :  { %356 = vmatpush.msra.mxu3 %v320_v21  ;;  %337 = vmatpush.msra.mxu2 %v317_v22  ;;  %v577_v21 = vunpack.c.h.bf16 %v575_v15 }
  0xb9   :  { %357 = vmatpush.msra.mxu3 %v318_v23  ;;  %338 = vmatpush.msra.mxu2 %v315_v24 }
  0xbb   :  { %358 = vmatpush.msra.mxu3 %v316_v25  ;;  %339 = vmatpush.msra.mxu2 %v313_v28 }
  0xbd   :  { %359 = vmatpush.msra.mxu3 %v314_v29  ;;  %340 = vmatpush.msra.mxu2 %v311_v31 }
  0xbf   :  { %360 = vmatpush.msra.mxu3 %v312_v32  ;;  %341 = vmatpush.msra.mxu2 %v309_v37  ;;  %v481_v37 = vld [vmem:[#allocation14 + $0x70] sm:$0xff] }
  0xc1   :  { %361 = vmatpush.msra.mxu3 %v310_v38  ;;  %342 = vmatpush.msra.mxu2 %v307_v40  ;;  %v480_v38 = vld [vmem:[#allocation14 + $0x68] sm:$0xff]  ;;  %v478_v40 = vld [vmem:[#allocation14 + $0x58] sm:$0xff] }
  0xc3   :  { %362 = vmatpush.msra.mxu3 %v308_v41  ;;  %343 = vmatpush.msra.mxu2 %v305_v44  ;;  %v477_v41 = vld [vmem:[#allocation14 + $0x50] sm:$0xff]  ;;  %v474_v44 = vld [vmem:[#allocation14 + $0x38] sm:$0xff] }
  0xc5   :  { %363 = vmatpush.msra.mxu3 %v306_v45  ;;  %344 = vmatpush.msra.mxu2 %v303_v48  ;;  %v473_v45 = vld [vmem:[#allocation14 + $0x30] sm:$0xff]  ;;  %v470_v48 = vld [vmem:[#allocation14 + $0x18] sm:$0xff] }
  0xc7   :  { %364 = vmatpush.msra.mxu3 %v304_v49  ;;  %345 = vmatpush.msra.mxu2 %v301_v51  ;;  %v469_v49 = vld [vmem:[#allocation14 + $0x10] sm:$0xff]  ;;  %v467_v51 = vld [vmem:[#allocation14] sm:$0xff] }
  0xc9   :  { %365 = vmatpush.msra.mxu3 %v302_v52  ;;  %346 = vmatpush.msra.mxu2 %v299_v53  ;;  %v327_v52 = vld [vmem:[%s981_s6] sm:$0x3]  ;;  %s856_s6 = smov [#allocation16]  }
  0xca   :  { %v330_v53 = vperm.slane %v327_v52, 1  ;;  %s553_s19 = sshll.u32 %s856_s6, 4  ;;  %s554_s19 = int_to_ptr.vmem [resolvable:$true] %s553_s19 }
  0xcb   :  { %366 = vmatpush.msra.mxu3 %v300_v54 }
  0xdc   :  { %380 = vadd.xlane.f32.xlu1 %v379_v36 }
 0x124   :  { %v238_v58 = vpop.permute.xlu1 %237  ;;  %v231_v59 = vpop.permute.xlu0 %230 }
 0x125   :  { %v240_v60 = vmul.f32 %v573_v56, %v238_v58  ;;  %v239_v61 = vmul.f32 %v572_v57, %v231_v59  ;;  %v297_v56 = vld [vmem:[#allocation10 + $0x10] sm:$0xff]  ;;  %v295_v57 = vld [vmem:[#allocation10] sm:$0xff]  ;;  %v296_v58 = vld [vmem:[#allocation10 + $0x8] sm:$0xff] }
 0x126   :  { %347 = vmatpush.msra.mxu2 %v297_v56  ;;  %v441_v59 = vld [vmem:[#allocation13 + $0x78] sm:$0xff] }
 0x127   :  { %v247_v62 = vrot.slane %v240_v60, 4  ;;  %v241_v63 = vrot.slane %v239_v61, 4  ;;  %446 = vmatpush.msrb.mxu0 %v441_v59 }
 0x128   :  { %348 = vmatpush.msra.mxu2 %v295_v57 }
 0x129   :  { %v248_v0 = vadd.f32 %v247_v62, %v240_v60  ;;  %v242_v1 = vadd.f32 %v241_v63, %v239_v61  ;;  %v440_v60 = vld [vmem:[#allocation13 + $0x70] sm:$0xff]  ;;  %v439_v61 = vld [vmem:[#allocation13 + $0x68] sm:$0xff]  ;;  %v438_v62 = vld [vmem:[#allocation13 + $0x60] sm:$0xff] }
 0x12a   :  { %447 = vmatpush.msrb.mxu0 %v440_v60  ;;  %v437_v63 = vld [vmem:[#allocation13 + $0x58] sm:$0xff] }
 0x12b   :  { %v249_v3 = vrot.slane %v248_v0, 2  ;;  %v243_v4 = vrot.slane %v242_v1, 2 }
 0x12c   :  { %448 = vmatpush.msrb.mxu0 %v439_v61 }
 0x12d   :  { %v250_v5 = vadd.f32 %v249_v3, %v248_v0  ;;  %v244_v6 = vadd.f32 %v243_v4, %v242_v1  ;;  %v436_v0 = vld [vmem:[#allocation13 + $0x50] sm:$0xff]  ;;  %v435_v1 = vld [vmem:[#allocation13 + $0x48] sm:$0xff]  ;;  %v434_v3 = vld [vmem:[#allocation13 + $0x40] sm:$0xff] }
 0x12e   :  { %449 = vmatpush.msrb.mxu0 %v438_v62  ;;  %v433_v4 = vld [vmem:[#allocation13 + $0x38] sm:$0xff] }
 0x12f   :  { %v251_v7 = vrot.slane %v250_v5, 1  ;;  %v245_v8 = vrot.slane %v244_v6, 1 }
 0x130   :  { %450 = vmatpush.msrb.mxu0 %v437_v63 }
 0x131   :  { %v246_v9 = vadd.f32 %v245_v8, %v244_v6  ;;  %v252_v10 = vadd.f32 %v251_v7, %v250_v5  ;;  %v432_v5 = vld [vmem:[#allocation13 + $0x30] sm:$0xff]  ;;  %v431_v6 = vld [vmem:[#allocation13 + $0x28] sm:$0xff]  ;;  %v197_v7 = vpop.f32.mrf.mxu0  ;;  %v430_v8 = vld [vmem:[#allocation13 + $0x20] sm:$0xff] }
 0x132   :  { %451 = vmatpush.msrb.mxu0 %v436_v0 }
 0x133   :  { %v272_v11 = vsel %vm271_vm5, %v252_v10, %v246_v9  ;;  %v429_v10 = vld [vmem:[#allocation13 + $0x18] sm:$0xff] }
 0x134   :  { %290 = vmatmul.f32.vlgmr.msra.gmra.mxu1 %v272_v11  ;;  %452 = vmatpush.msrb.mxu0 %v435_v1  ;;  %v855_v1 = vmov 0  }
 0x135   :  { %597 = vset.pattern.permute.xlu1 %v855_v1  ;;  %598 = vset.pattern.permute.xlu0 %v855_v1 }
 0x136   :  { %453 = vmatpush.msrb.mxu0 %v434_v3 }
 0x138   :  { %454 = vmatpush.msrb.mxu0 %v433_v4 }
 0x13a   :  { %455 = vmatpush.msrb.mxu0 %v432_v5 }
 0x13c   :  { %456 = vmatpush.msrb.mxu0 %v431_v6 }
 0x13e   :  { %457 = vmatpush.msrb.mxu0 %v430_v8  ;;  %v329_v8 = vperm.slane %v327_v52, 0 }
 0x140   :  { %458 = vmatpush.msrb.mxu0 %v429_v10 }
 0x14f   :  { %v381_v12 = vpop.xlane.xlu1 %380 }
 0x150   :  { %v382_v16 = vmax.f32 %v381_v12, 1.0  ;;  %v428_v12 = vld [vmem:[#allocation13 + $0x10] sm:$0xff] }
 0x151   :  { %459 = vmatpush.msrb.mxu0 %v428_v12 }
 0x152   :  { %601 = vrcp.f32 %v382_v16  ;;  %v394_v33 = vand.u32 2147483648, %v382_v16  ;;  %v392_v36 = vand.u32 2147483647, %v382_v16  ;;  %vm388_vm7 = vweird.f32 %v382_v16 }
 0x153   :  { %460 = vmatpush.msrb.mxu0 %v427_v13 }
 0x154   :  { %v395_v42 = vor.u32 1.1754944e-38, %v394_v33  ;;  %vm393_vm9 = vcmp.eq.f32.partialorder %v392_v36, 8.507059e+37  ;;  %v482_v36 = vld [vmem:[#allocation14 + $0x78] sm:$0xff] }
 0x155   :  { %461 = vmatpush.msrb.mxu0 %v426_v14  ;;  %483 = vmatpush.msrb.mxu1 %v482_v36 }
 0x157   :  { %484 = vmatpush.msrb.mxu1 %v481_v37 }
 0x158   :  { %v602_v26 = vpop.eup %601 }
 0x159   :  { %v384_v27 = vmul.f32 %v602_v26, %v382_v16  ;;  %vm389_vm6 = vweird.f32 %v602_v26  ;;  %v576_v16 = vunpack.c.l.bf16 %v575_v15  ;;  %485 = vmatpush.msrb.mxu1 %v480_v38 }
 0x15a   :  { %vm390_vm8 = vmor %vm388_vm7, %vm389_vm6 }
 0x15b   :  { %v385_v30 = vsub.f32 1.0, %v384_v27 }
 0x15d   :  { %v386_v34 = vmul.f32 %v602_v26, %v385_v30 }
 0x15f   :  { %v387_v39 = vadd.f32 %v602_v26, %v386_v34 }
 0x161   :  { %v391_v43 = vsel %vm390_vm8, %v602_v26, %v387_v39  ;;  %v479_v39 = vld [vmem:[#allocation14 + $0x60] sm:$0xff] }
 0x162   :  { %v396_v46 = vsel %vm393_vm9, %v395_v42, %v391_v43  ;;  %486 = vmatpush.msrb.mxu1 %v479_v39  ;;  %v476_v42 = vld [vmem:[#allocation14 + $0x48] sm:$0xff]  ;;  %v475_v43 = vld [vmem:[#allocation14 + $0x40] sm:$0xff] }
 0x163   :  { %v397_v47 = vmul.f32 %v396_v46, %v961_v35  ;;  %v298_v35 = vld [vmem:[#allocation10 + $0x18] sm:$0xff]  ;;  %v472_v46 = vld [vmem:[#allocation14 + $0x28] sm:$0xff] }
 0x164   :  { %367 = vmatpush.msra.mxu3 %v298_v35  ;;  %487 = vmatpush.msrb.mxu1 %v478_v40 }
 0x165   :  { %v398_v50 = vperm.slane %v397_v47, 0  ;;  %v405_v55 = vperm.slane %v397_v47, 1  ;;  %v471_v47 = vld [vmem:[#allocation14 + $0x20] sm:$0xff] }
 0x166   :  { %368 = vmatpush.msra.mxu3 %v296_v58  ;;  %488 = vmatpush.msrb.mxu1 %v477_v41 }
 0x167   :  { %403 = vperm.xlu2 %596, %v398_v50   ;;  %v468_v50 = vld [vmem:[#allocation14 + $0x8] sm:$0xff] }
 0x168   :  { %489 = vmatpush.msrb.mxu1 %v476_v42 }
 0x16a   :  { %490 = vmatpush.msrb.mxu1 %v475_v43 }
 0x16c   :  { %491 = vmatpush.msrb.mxu1 %v474_v44 }
 0x16e   :  { %492 = vmatpush.msrb.mxu1 %v473_v45 }
 0x16f   :  { %410 = vperm.xlu2 %596, %v405_v55  }
 0x170   :  { %493 = vmatpush.msrb.mxu1 %v472_v46 }
 0x172   :  { %494 = vmatpush.msrb.mxu1 %v471_v47 }
 0x174   :  { %495 = vmatpush.msrb.mxu1 %v470_v48 }
 0x176   :  { %496 = vmatpush.msrb.mxu1 %v469_v49 }
 0x178   :  { %497 = vmatpush.msrb.mxu1 %v468_v50 }
 0x17a   :  { %498 = vmatpush.msrb.mxu1 %v467_v51 }
 0x1b1   :  { %v291_v9 = vpop.f32.mrf.mxu1 }
 0x1b2   :  { %v294_v11 = vmul.f32 %v291_v9, %v197_v7 }
 0x1b4   :  { %349 = vmatmul.f32.vlgmr.msra.gmra.mxu2 %v294_v11  ;;  %369 = vmatmul.f32.vlgmr.msra.gmra.mxu3 %v294_v11 }
 0x1c1   :  { %v404_v17 = vpop.permute.xlu2 %403 }
 0x1c2   :  { %v412_v18 = vmul.f32 %v576_v16, %v404_v17 }
 0x1c4   :  { %v414_v19 = vrot.slane %v412_v18, 4 }
 0x1c6   :  { %v415_v20 = vadd.f32 %v414_v19, %v412_v18 }
 0x1c8   :  { %v416_v23 = vrot.slane %v415_v20, 2 }
 0x1c9   :  { %v411_v22 = vpop.permute.xlu2 %410 }
 0x1ca   :  { %v413_v24 = vmul.f32 %v577_v21, %v411_v22  ;;  %v417_v26 = vadd.f32 %v416_v23, %v415_v20  ;;  %v518_v21 = vand.u32 127, %v226_v2 }
 0x1cc   :  { %v420_v25 = vrot.slane %v413_v24, 4  ;;  %v418_v29 = vrot.slane %v417_v26, 1  ;;  %vm519_vm15 = vcmp.lt.s32.totalorder %v518_v21, 3  ;;  %vm540_vm0 = vcmp.eq.s32.totalorder %v518_v21, 3 }
 0x1ce   :  { %v421_v27 = vadd.f32 %v420_v25, %v413_v24  ;;  %v419_v32 = vadd.f32 %v418_v29, %v417_v26 }
 0x1d0   :  { %v422_v28 = vrot.slane %v421_v27, 2 }
 0x1d2   :  { %v423_v30 = vadd.f32 %v422_v28, %v421_v27 }
 0x1d4   :  { %v424_v31 = vrot.slane %v423_v30, 1 }
 0x1d6   :  { %v425_v33 = vadd.f32 %v424_v31, %v423_v30 }
 0x1d8   :  { %v444_v34 = vsel %vm271_vm5, %v425_v33, %v419_v32 }
 0x1d9   :  { %462 = vmatmul.f32.vlgmr.msrb.gmra.mxu0 %v444_v34 }
 0x237   :  { %v370_v54 = vpop.f32.mrf.mxu3  ;;  %v350_v9 = vpop.f32.mrf.mxu2 }
 0x238   :  { %v371_v55 = vadd.f32 %v370_v54, %v330_v53  ;;  %v351_v10 = vadd.f32 %v350_v9, %v329_v8 }
 0x23a   :  { %603 = vtanh.f32 %v371_v55  ;;  %v569_v11 = vmul.f32 -1.442695, %v351_v10 }
 0x240   :  { %v604_v56 = vpop.eup %603 }
 0x256   :  { %v463_v35 = vpop.f32.mrf.mxu0 }
 0x257   :  { %v466_v57 = vadd.f32 %v604_v56, %v463_v35 }
 0x259   :  { %499 = vmatmul.f32.vlgmr.msrb.gmra.mxu1 %v466_v57 }
 0x2d6   :  { %v500_v58 = vpop.f32.mrf.mxu1 }
 0x2d7   :  { %v504_v59 = vsel %vm503_vm10, %v500_v58, -inf }
 0x2d8   :  { %505 = vmax.xlane.f32.xlu2 %v504_v59 }
 0x34b   :  { %v506_v60 = vpop.xlane.xlu2 %505 }
 0x34c   :  { %v507_v61 = vsub.f32 %v500_v58, %v506_v60 }
 0x34e   :  { %v508_v62 = vmul.f32 1.442695, %v507_v61 }
 0x350   :  { %605 = vpow2.f32 %v508_v62 }
 0x356   :  { %v606_v63 = vpop.eup %605 }
 0x357   :  { %v510_v0 = vsel %vm503_vm10, %v606_v63, 0.0 }
 0x358   :  { %511 = vadd.xlane.f32.xlu0 %v510_v0 }
 0x3cb   :  { %v512_v3 = vpop.xlane.xlu0 %511 }
 0x3cc   :  { %607 = vlog2.f32 %v512_v3 }
 0x3cd   :  { %609 = vpow2.f32 %v569_v11 }
 0x3d2   :  { %v608_v4 = vpop.eup %607 }
 0x3d3   :  { %v514_v5 = vmul.f32 0.6931472, %v608_v4  ;;  %v610_v12 = vpop.eup %609 }
 0x3d4   :  { %v523_v13 = vadd.f32 1.0, %v610_v12 }
 0x3d5   :  { %v515_v6 = vadd.f32 %v514_v5, %v506_v60 }
 0x3d6   :  { %611 = vrcp.f32 %v523_v13  ;;  %v535_v19 = vand.u32 2147483648, %v523_v13  ;;  %vm529_vm12 = vweird.f32 %v523_v13  ;;  %v533_v20 = vand.u32 2147483647, %v523_v13 }
 0x3d7   :  { %v516_v7 = vsub.f32 %v515_v6, %v500_v58 }
 0x3d8   :  { %v536_v23 = vor.u32 1.1754944e-38, %v535_v19  ;;  %vm534_vm14 = vcmp.eq.f32.partialorder %v533_v20, 8.507059e+37 }
 0x3d9   :  { %543 = vperm.xlu1 %597, %v516_v7  }
 0x3dc   :  { %v612_v14 = vpop.eup %611 }
 0x3dd   :  { %v525_v15 = vmul.f32 %v612_v14, %v523_v13  ;;  %vm530_vm11 = vweird.f32 %v612_v14 }
 0x3de   :  { %vm531_vm13 = vmor %vm529_vm12, %vm530_vm11 }
 0x3df   :  { %v526_v16 = vsub.f32 1.0, %v525_v15 }
 0x3e1   :  { %v527_v17 = vmul.f32 %v612_v14, %v526_v16 }
 0x3e3   :  { %v528_v18 = vadd.f32 %v612_v14, %v527_v17 }
 0x3e5   :  { %v532_v22 = vsel %vm531_vm13, %v612_v14, %v528_v18 }
 0x3e6   :  { %v537_v24 = vsel %vm534_vm14, %v536_v23, %v532_v22 }
 0x3e7   :  { %v539_v26 = vsel %vm519_vm15, %v537_v24, 0.0 }
 0x44b   :  { %v544_v25 = vpop.permute.xlu1 %543 }
 0x44c   :  { %v546_v27 = vsel %vm540_vm0, %v544_v25, %v539_v26 }
 0x44d   :  { %547 = vst [vmem:[#allocation16] sm:$0x3] %v546_v27 }
 0x44e   :  { %558 = dma.vmem_to_hbm [thread:$0]  %s554_s19, 32, %s556_s22, [#allocation4]  }
 0x44f   :  { %839 = dma.done.wait [#allocation4], 32  }
 0x450   :  { %840 = vsyncadd [#allocation4], 4294967264 }
 0x451   :  { %563 = vsyncpa [#allocation3], 1 }
 0x452   :  { %564 = vsyncpa [#allocation6], 1 }
 0x453   :  { %565 = vsyncpa [#allocation9], 1 }
 0x454   :  { %566 = vsyncpa [#allocation12], 1 }
 0x455   :  { %567 = vsyncpa [#allocation15], 1 }
 0x456   :  { %568 = vsyncpa [#allocation4], 1 }

</bundles_post_ra>
